<compile_context>
chip_gen: v5e
topology: v5e:2x2
jax: 0.10.0
libtpu: 0.0.40
codegen_flags: <defaults>
</compile_context>

<pallas_src>
import functools

import jax
import jax.numpy as jnp
from jax import lax
from jax.experimental import pallas as pl
from jax.experimental.pallas import tpu as pltpu

EPS = 1e-8
_LANE = 128


def _dsconv_kernel(x_ref, wdw_ref, alpha_ref, gamma_ref, beta_ref, wpw_ref,
                   o_ref, *, ks, dilation, k_out, norm_type):
    """One batch row: depthwise conv + (chomp) + PReLU + norm + pointwise conv.

    x_ref:     (1, H, Kin_t)   zero-padded input (left conv padding + lane pad)
    wdw_ref:   (ks, H, 1)      depthwise weights (tap-major)
    alpha_ref: (1, 1)          PReLU shared alpha
    gamma_ref: (H, 1), beta_ref: (H, 1)   norm affine params
    wpw_ref:   (B, H)          pointwise (1x1) weights
    o_ref:     (1, B, Kt)      lane-padded output (first k_out columns valid)
    """
    kt = o_ref.shape[-1]
    h = x_ref.shape[1]

    x = x_ref[0].astype(jnp.float32)                      # (H, Kin_t)

    # ---- depthwise conv (stride=1); chomp folded in: only kt columns made --
    y = wdw_ref[0].astype(jnp.float32) * x[:, 0:kt]
    for j in range(1, ks):
        start = j * dilation
        y = y + wdw_ref[j].astype(jnp.float32) * x[:, start:start + kt]

    # ---- PReLU (single shared alpha, nn.PReLU() default) -------------------
    alpha = alpha_ref[...].astype(jnp.float32)            # (1, 1) broadcasts
    z = jnp.where(y >= 0.0, y, alpha * y)

    gamma = gamma_ref[...].astype(jnp.float32)             # (H, 1)
    beta = beta_ref[...].astype(jnp.float32)               # (H, 1)

    if norm_type == "gLN":
        # Global layer norm over (channels, valid time) of this batch row.
        # Mask out the lane-padding columns so stats match the true K_out.
        n_valid = float(h * k_out)
        mask = lax.broadcasted_iota(jnp.int32, (h, kt), 1) < k_out
        zm = jnp.where(mask, z, 0.0)
        mean = jnp.sum(jnp.sum(zm, axis=1, keepdims=True),
                       axis=0, keepdims=True) / n_valid            # (1, 1)
        dz = z - mean
        var = jnp.sum(jnp.sum(jnp.where(mask, dz * dz, 0.0),
                              axis=1, keepdims=True),
                      axis=0, keepdims=True) / n_valid             # (1, 1)
        zn = gamma * dz * lax.rsqrt(var + EPS) + beta
    elif norm_type == "cLN":
        # Channel-wise layer norm: stats per timestep over channels.
        mean = jnp.mean(z, axis=0, keepdims=True)                  # (1, Kt)
        dz = z - mean
        var = jnp.mean(dz * dz, axis=0, keepdims=True)             # (1, Kt)
        zn = gamma * dz * lax.rsqrt(var + EPS) + beta
    else:
        # TODO(synk): BatchNorm1d path (cross-batch running stats) not
        # implemented in-kernel; wrapper rejects it before getting here.
        zn = z

    # ---- pointwise 1x1 conv on the MXU: [B,H] @ [H,Kt] ---------------------
    out = jnp.dot(wpw_ref[...].astype(jnp.float32), zn,
                  preferred_element_type=jnp.float32)
    o_ref[0] = out.astype(o_ref.dtype)


def depthwise_separable_conv(x, dw_weight, prelu_alpha, gamma, beta, pw_weight,
                             *, kernel_size, stride=1, padding=0, dilation=1,
                             norm_type="gLN", causal=False):
    """Forward pass of DepthwiseSeparableConv.

    Args:
      x:          [M, H, K]       input
      dw_weight:  [H, kernel_size]   depthwise Conv1d weight (weight[:, 0, :])
      prelu_alpha: scalar            nn.PReLU() shared parameter
      gamma, beta: [H]               norm affine parameters
      pw_weight:  [B, H]             pointwise Conv1d weight (weight[:, :, 0])
    Returns:
      [M, B, K_out]
    """
    M, H, K = x.shape
    B = pw_weight.shape[0]
    assert dw_weight.shape == (H, kernel_size)
    assert pw_weight.shape[1] == H
    if stride != 1:
        # TODO(synk): stride > 1 depthwise conv not implemented (ConvTasNet
        # TCN uses stride=1 everywhere).
        raise NotImplementedError("stride must be 1")
    if norm_type not in ("gLN", "cLN"):
        # TODO(synk): BatchNorm1d norm path not implemented in-kernel.
        raise NotImplementedError("norm_type must be 'gLN' or 'cLN'")
    if causal:
        assert padding > 0, "causal chomp requires padding > 0"

    span = dilation * (kernel_size - 1)
    conv_len = K + 2 * padding - span          # conv output length (stride=1)
    k_out = conv_len - padding if causal else conv_len   # chomp folded here
    assert k_out > 0

    # Lane-dense output: compute Kt (multiple of 128) columns, slice outside.
    kt = ((k_out + _LANE - 1) // _LANE) * _LANE
    kin_t = kt + span
    right_pad = kin_t - (K + padding)
    assert right_pad >= 0
    x_pad = jnp.pad(x, ((0, 0), (0, 0), (padding, right_pad)))

    wdw = jnp.transpose(dw_weight)[:, :, None]            # (ks, H, 1)
    alpha2 = jnp.reshape(prelu_alpha, (1, 1)).astype(x.dtype)
    gamma2 = jnp.reshape(gamma, (H, 1)).astype(x.dtype)
    beta2 = jnp.reshape(beta, (H, 1)).astype(x.dtype)

    kernel = functools.partial(_dsconv_kernel, ks=kernel_size,
                               dilation=dilation, k_out=k_out,
                               norm_type=norm_type)

    out_padded = pl.pallas_call(
        kernel,
        out_shape=jax.ShapeDtypeStruct((M, B, kt), x.dtype),
        grid_spec=pltpu.PrefetchScalarGridSpec(
            num_scalar_prefetch=0,
            grid=(M,),
            in_specs=[
                pl.BlockSpec((1, H, kin_t), lambda m: (m, 0, 0)),
                pl.BlockSpec((kernel_size, H, 1), lambda m: (0, 0, 0)),
                pl.BlockSpec((1, 1), lambda m: (0, 0)),
                pl.BlockSpec((H, 1), lambda m: (0, 0)),
                pl.BlockSpec((H, 1), lambda m: (0, 0)),
                pl.BlockSpec((B, H), lambda m: (0, 0)),
            ],
            out_specs=pl.BlockSpec((1, B, kt), lambda m: (m, 0, 0)),
        ),
        compiler_params=pltpu.CompilerParams(
            dimension_semantics=("parallel",),
            # Raised above the v5e/v6e default scoped limit so large (H, K)
            # tiles pipeline; kept under v7x's 64 MiB physical VMEM.
            vmem_limit_bytes=48 * 1024 * 1024,
        ),
    )(x_pad, wdw, alpha2, gamma2, beta2, pw_weight)

    return out_padded[:, :, :k_out]


def _reference(x, dw_weight, prelu_alpha, gamma, beta, pw_weight,
               *, kernel_size, stride, padding, dilation, norm_type, causal):
    """Pure-JAX reference mirroring the PyTorch module."""
    M, H, K = x.shape
    y = lax.conv_general_dilated(
        x, dw_weight[:, None, :],
        window_strides=(stride,), padding=[(padding, padding)],
        rhs_dilation=(dilation,),
        dimension_numbers=("NCH", "OIH", "NCH"),
        feature_group_count=H)
    if causal and padding > 0:
        y = y[:, :, :-padding]
    y = jnp.where(y >= 0, y, prelu_alpha * y)
    g = gamma.reshape(1, H, 1)
    b = beta.reshape(1, H, 1)
    if norm_type == "gLN":
        mean = jnp.mean(y, axis=(1, 2), keepdims=True)
        var = jnp.mean((y - mean) ** 2, axis=(1, 2), keepdims=True)
        y = g * (y - mean) / jnp.sqrt(var + EPS) + b
    elif norm_type == "cLN":
        mean = jnp.mean(y, axis=1, keepdims=True)
        var = jnp.mean((y - mean) ** 2, axis=1, keepdims=True)
        y = g * (y - mean) / jnp.sqrt(var + EPS) + b
    return jnp.einsum("bh,mhk->mbk", pw_weight, y)


if __name__ == "__main__":
    key = jax.random.PRNGKey(0)
    M, H, B, K = 2, 4, 8, 16
    kernel_size, stride, dilation = 3, 1, 2
    padding = (kernel_size - 1) * dilation      # causal padding = 4
    causal = True
    norm_type = "gLN"

    k1, k2, k3, k4, k5 = jax.random.split(key, 5)
    x = jax.random.normal(k1, (M, H, K), dtype=jnp.float32)
    dw_w = 0.5 * jax.random.normal(k2, (H, kernel_size), dtype=jnp.float32)
    pw_w = 0.5 * jax.random.normal(k3, (B, H), dtype=jnp.float32)
    gamma = 1.0 + 0.1 * jax.random.normal(k4, (H,), dtype=jnp.float32)
    beta = 0.1 * jax.random.normal(k5, (H,), dtype=jnp.float32)
    alpha = jnp.float32(0.25)                   # nn.PReLU() default init

    out = depthwise_separable_conv(
        x, dw_w, alpha, gamma, beta, pw_w,
        kernel_size=kernel_size, stride=stride, padding=padding,
        dilation=dilation, norm_type=norm_type, causal=causal)
    out = jax.block_until_ready(out)

    ref = _reference(
        x, dw_w, alpha, gamma, beta, pw_w,
        kernel_size=kernel_size, stride=stride, padding=padding,
        dilation=dilation, norm_type=norm_type, causal=causal)

    assert out.shape == (M, B, K), out.shape
    max_err = float(jnp.max(jnp.abs(out - ref)))
    assert jnp.allclose(out, ref, rtol=1e-4, atol=1e-4), max_err

    print("KERNEL_OK")
</pallas_src>

<mosaic_0001>
module attributes {stable_mosaic.version = 11 : i64} {
  func.func @_dsconv_kernel(%arg0: i32, %arg1: memref<1x4x132xf32, #tpu.memory_space<vmem>>, %arg2: memref<3x4x1xf32, #tpu.memory_space<vmem>>, %arg3: memref<1x1xf32, #tpu.memory_space<vmem>>, %arg4: memref<4x1xf32, #tpu.memory_space<vmem>>, %arg5: memref<4x1xf32, #tpu.memory_space<vmem>>, %arg6: memref<8x4xf32, #tpu.memory_space<vmem>>, %arg7: memref<1x8x128xf32, #tpu.memory_space<vmem>>) attributes {dimension_semantics = [#tpu.dimension_semantics<parallel>], iteration_bounds = array<i64: 2>, scalar_prefetch = 0 : i64, scratch_operands = 0 : i64, tpu.core_type = #tpu.core_type<tc>, window_params = [{transform_indices = @transform_0, window_bounds = array<i64: 1, 4, 132>}, {pipeline_mode = #tpu.pipeline_mode<synchronous>, transform_indices = @transform_1, window_bounds = array<i64: 3, 4, 1>}, {pipeline_mode = #tpu.pipeline_mode<synchronous>, transform_indices = @transform_2, window_bounds = array<i64: 1, 1>}, {pipeline_mode = #tpu.pipeline_mode<synchronous>, transform_indices = @transform_3, window_bounds = array<i64: 4, 1>}, {pipeline_mode = #tpu.pipeline_mode<synchronous>, transform_indices = @transform_4, window_bounds = array<i64: 4, 1>}, {pipeline_mode = #tpu.pipeline_mode<synchronous>, transform_indices = @transform_5, window_bounds = array<i64: 8, 4>}, {transform_indices = @transform_6, window_bounds = array<i64: 1, 8, 128>}]} {
    %c0 = arith.constant 0 : index
    %c0_0 = arith.constant 0 : index
    %c0_1 = arith.constant 0 : index
    %0 = vector.load %arg1[%c0, %c0_0, %c0_1] : memref<1x4x132xf32, #tpu.memory_space<vmem>>, vector<1x4x132xf32>
    %1 = vector.shape_cast %0 : vector<1x4x132xf32> to vector<4x132xf32>
    %c0_2 = arith.constant 0 : index
    %c0_3 = arith.constant 0 : index
    %c0_4 = arith.constant 0 : index
    %2 = vector.load %arg2[%c0_2, %c0_3, %c0_4] : memref<3x4x1xf32, #tpu.memory_space<vmem>>, vector<1x4x1xf32>
    %3 = vector.shape_cast %2 : vector<1x4x1xf32> to vector<4x1xf32>
    %4 = vector.extract_strided_slice %1 {offsets = [0, 0], sizes = [4, 128], strides = [1, 1]} : vector<4x132xf32> to vector<4x128xf32>
    %5 = vector.broadcast %3 : vector<4x1xf32> to vector<4x128xf32>
    %6 = arith.mulf %5, %4 : vector<4x128xf32>
    %c1 = arith.constant 1 : index
    %c0_5 = arith.constant 0 : index
    %c0_6 = arith.constant 0 : index
    %7 = vector.load %arg2[%c1, %c0_5, %c0_6] : memref<3x4x1xf32, #tpu.memory_space<vmem>>, vector<1x4x1xf32>
    %8 = vector.shape_cast %7 : vector<1x4x1xf32> to vector<4x1xf32>
    %9 = vector.extract_strided_slice %1 {offsets = [0, 2], sizes = [4, 128], strides = [1, 1]} : vector<4x132xf32> to vector<4x128xf32>
    %10 = vector.broadcast %8 : vector<4x1xf32> to vector<4x128xf32>
    %11 = arith.mulf %10, %9 : vector<4x128xf32>
    %12 = arith.addf %6, %11 : vector<4x128xf32>
    %c2 = arith.constant 2 : index
    %c0_7 = arith.constant 0 : index
    %c0_8 = arith.constant 0 : index
    %13 = vector.load %arg2[%c2, %c0_7, %c0_8] : memref<3x4x1xf32, #tpu.memory_space<vmem>>, vector<1x4x1xf32>
    %14 = vector.shape_cast %13 : vector<1x4x1xf32> to vector<4x1xf32>
    %15 = vector.extract_strided_slice %1 {offsets = [0, 4], sizes = [4, 128], strides = [1, 1]} : vector<4x132xf32> to vector<4x128xf32>
    %16 = vector.broadcast %14 : vector<4x1xf32> to vector<4x128xf32>
    %17 = arith.mulf %16, %15 : vector<4x128xf32>
    %18 = arith.addf %12, %17 : vector<4x128xf32>
    %c0_9 = arith.constant 0 : index
    %c0_10 = arith.constant 0 : index
    %19 = vector.load %arg3[%c0_9, %c0_10] : memref<1x1xf32, #tpu.memory_space<vmem>>, vector<1x1xf32>
    %cst = arith.constant 0.000000e+00 : f32
    %20 = vector.broadcast %cst : f32 to vector<4x128xf32>
    %21 = arith.cmpf oge, %18, %20 : vector<4x128xf32>
    %22 = vector.broadcast %19 : vector<1x1xf32> to vector<4x128xf32>
    %23 = arith.mulf %22, %18 : vector<4x128xf32>
    %24 = arith.select %21, %18, %23 : vector<4x128xi1>, vector<4x128xf32>
    %c0_11 = arith.constant 0 : index
    %c0_12 = arith.constant 0 : index
    %25 = vector.load %arg4[%c0_11, %c0_12] : memref<4x1xf32, #tpu.memory_space<vmem>>, vector<4x1xf32>
    %c0_13 = arith.constant 0 : index
    %c0_14 = arith.constant 0 : index
    %26 = vector.load %arg5[%c0_13, %c0_14] : memref<4x1xf32, #tpu.memory_space<vmem>>, vector<4x1xf32>
    %27 = tpu.iota {dimensions = array<i32: 1>} : vector<4x128xi32>
    %c16_i32 = arith.constant 16 : i32
    %28 = vector.broadcast %c16_i32 : i32 to vector<4x128xi32>
    %29 = arith.cmpi slt, %27, %28 : vector<4x128xi32>
    %cst_15 = arith.constant 0.000000e+00 : f32
    %30 = vector.broadcast %cst_15 : f32 to vector<4x128xf32>
    %31 = arith.select %29, %24, %30 : vector<4x128xi1>, vector<4x128xf32>
    %cst_16 = arith.constant dense<0.000000e+00> : vector<4xf32>
    %32 = vector.multi_reduction <add>, %31, %cst_16 [1] : vector<4x128xf32> to vector<4xf32>
    %33 = vector.shape_cast %32 : vector<4xf32> to vector<4x1xf32>
    %cst_17 = arith.constant dense<0.000000e+00> : vector<1xf32>
    %34 = vector.multi_reduction <add>, %33, %cst_17 [0] : vector<4x1xf32> to vector<1xf32>
    %35 = vector.shape_cast %34 : vector<1xf32> to vector<1x1xf32>
    %cst_18 = arith.constant 6.400000e+01 : f32
    %36 = vector.broadcast %cst_18 : f32 to vector<1x1xf32>
    %37 = arith.divf %35, %36 : vector<1x1xf32>
    %38 = vector.broadcast %37 : vector<1x1xf32> to vector<4x128xf32>
    %39 = arith.subf %24, %38 : vector<4x128xf32>
    %40 = arith.mulf %39, %39 : vector<4x128xf32>
    %cst_19 = arith.constant 0.000000e+00 : f32
    %41 = vector.broadcast %cst_19 : f32 to vector<4x128xf32>
    %42 = arith.select %29, %40, %41 : vector<4x128xi1>, vector<4x128xf32>
    %cst_20 = arith.constant dense<0.000000e+00> : vector<4xf32>
    %43 = vector.multi_reduction <add>, %42, %cst_20 [1] : vector<4x128xf32> to vector<4xf32>
    %44 = vector.shape_cast %43 : vector<4xf32> to vector<4x1xf32>
    %cst_21 = arith.constant dense<0.000000e+00> : vector<1xf32>
    %45 = vector.multi_reduction <add>, %44, %cst_21 [0] : vector<4x1xf32> to vector<1xf32>
    %46 = vector.shape_cast %45 : vector<1xf32> to vector<1x1xf32>
    %cst_22 = arith.constant 6.400000e+01 : f32
    %47 = vector.broadcast %cst_22 : f32 to vector<1x1xf32>
    %48 = arith.divf %46, %47 : vector<1x1xf32>
    %49 = vector.broadcast %25 : vector<4x1xf32> to vector<4x128xf32>
    %50 = arith.mulf %49, %39 : vector<4x128xf32>
    %cst_23 = arith.constant 9.99999993E-9 : f32
    %51 = vector.broadcast %cst_23 : f32 to vector<1x1xf32>
    %52 = arith.addf %48, %51 : vector<1x1xf32>
    %53 = math.rsqrt %52 : vector<1x1xf32>
    %54 = vector.broadcast %53 : vector<1x1xf32> to vector<4x128xf32>
    %55 = arith.mulf %50, %54 : vector<4x128xf32>
    %56 = vector.broadcast %26 : vector<4x1xf32> to vector<4x128xf32>
    %57 = arith.addf %55, %56 : vector<4x128xf32>
    %c0_24 = arith.constant 0 : index
    %c0_25 = arith.constant 0 : index
    %58 = vector.load %arg6[%c0_24, %c0_25] : memref<8x4xf32, #tpu.memory_space<vmem>>, vector<8x4xf32>
    %cst_26 = arith.constant dense<0.000000e+00> : vector<8x128xf32>
    %59 = tpu.matmul %58, %57, %cst_26 {dimension_numbers = #tpu.dot_dimension_numbers<[1], [0], [0], [1], [0, 0, 1, 1], [], []>} : vector<8x4xf32>, vector<4x128xf32>, vector<8x128xf32> -> vector<8x128xf32>
    %c0_27 = arith.constant 0 : index
    %c0_28 = arith.constant 0 : index
    %c0_29 = arith.constant 0 : index
    %60 = vector.load %arg7[%c0_27, %c0_28, %c0_29] : memref<1x8x128xf32, #tpu.memory_space<vmem>>, vector<1x8x128xf32>
    %61 = vector.shape_cast %60 : vector<1x8x128xf32> to vector<8x128xf32>
    %62 = vector.shape_cast %59 : vector<8x128xf32> to vector<1x8x128xf32>
    tpu.vector_store %arg7[%c0_27, %c0_28, %c0_29], %62 {strides = array<i32>} : memref<1x8x128xf32, #tpu.memory_space<vmem>>, vector<1x8x128xf32>,
    return
  }
  func.func @transform_0(%arg0: i32) -> (i32, i32, i32) {
    %c0_i32 = arith.constant 0 : i32
    %c0_i32_0 = arith.constant 0 : i32
    %c0_i32_1 = arith.constant 0 : i32
    return %arg0, %c0_i32, %c0_i32_0 : i32, i32, i32
  }
  func.func @transform_1(%arg0: i32) -> (i32, i32, i32) {
    %c0_i32 = arith.constant 0 : i32
    %c0_i32_0 = arith.constant 0 : i32
    %c0_i32_1 = arith.constant 0 : i32
    %c0_i32_2 = arith.constant 0 : i32
    return %c0_i32, %c0_i32_0, %c0_i32_1 : i32, i32, i32
  }
  func.func @transform_2(%arg0: i32) -> (i32, i32) {
    %c0_i32 = arith.constant 0 : i32
    %c0_i32_0 = arith.constant 0 : i32
    %c0_i32_1 = arith.constant 0 : i32
    return %c0_i32, %c0_i32_0 : i32, i32
  }
  func.func @transform_3(%arg0: i32) -> (i32, i32) {
    %c0_i32 = arith.constant 0 : i32
    %c0_i32_0 = arith.constant 0 : i32
    %c0_i32_1 = arith.constant 0 : i32
    return %c0_i32, %c0_i32_0 : i32, i32
  }
  func.func @transform_4(%arg0: i32) -> (i32, i32) {
    %c0_i32 = arith.constant 0 : i32
    %c0_i32_0 = arith.constant 0 : i32
    %c0_i32_1 = arith.constant 0 : i32
    return %c0_i32, %c0_i32_0 : i32, i32
  }
  func.func @transform_5(%arg0: i32) -> (i32, i32) {
    %c0_i32 = arith.constant 0 : i32
    %c0_i32_0 = arith.constant 0 : i32
    %c0_i32_1 = arith.constant 0 : i32
    return %c0_i32, %c0_i32_0 : i32, i32
  }
  func.func @transform_6(%arg0: i32) -> (i32, i32, i32) {
    %c0_i32 = arith.constant 0 : i32
    %c0_i32_0 = arith.constant 0 : i32
    %c0_i32_1 = arith.constant 0 : i32
    return %arg0, %c0_i32, %c0_i32_0 : i32, i32, i32
  }
}

</mosaic_0001>

<bundles_post_ra>
// kernel: tpu_custom_call.1
= control target key start
LH: loop header
LB: loop body
LE: loop exit
PB: predicated region body
PF: predicated region fallthrough
CT: control target
= control target key end

     0   :  { %s758_s0 = inlined_call_operand.vmem [shape: f32[2,4,132], index: 0, kind: input, shape index: {}]   ;;  %s759_s1 = inlined_call_operand.vmem [shape: f32[3,4,1], index: 1, kind: input, shape index: {}]   ;;  %s760_s2 = inlined_call_operand.<no memory space> [shape: f32[1,1], index: 2, kind: input, shape index: {}]   ;;  %s761_s3 = inlined_call_operand.vmem [shape: f32[4,1], index: 3, kind: input, shape index: {}]   ;;  %s762_s4 = inlined_call_operand.vmem [shape: f32[4,1], index: 4, kind: input, shape index: {}]   ;;  %s763_s5 = inlined_call_operand.vmem [shape: f32[8,4], index: 5, kind: input, shape index: {}]   ;;  %s764_s6 = inlined_call_operand.hbm [shape: f32[2,8,128], index: 6, kind: output, shape index: {}]  }
   0x1   :  { %v11_v0 = vstv %s760_s2 }
   0x2   :  { %12 = vst [vmem:[#allocation2] sm:$0x1] %v11_v0 }
   0x3   :  { %13 = vsyncpa [#allocation4], 0 }
   0x4   :  { %15 = vsyncpa [#allocation4 + $0x1], 0  ;;  %s648_s23 = smov 0   ;;  %s650_s24 = smov 0  }
   0x5   :  { %s652_s25 = smov 0   ;;  %s654_s26 = smov 0  }
   0x6 LB: > { %s669_s2 = sadd.s32 4294967295, %s604_s26   ;;  %s476_s27 = sadd.s32 4294967294, %s604_s26   ;;  %s604_s26 = sphi %s654_s26, %s770_s26   ;;  %s600_s25 = sphi %s652_s25, %s769_s25   ;;  %s596_s24 = sphi %s650_s24, %s768_s24   ;;  %s592_s23 = sphi %s648_s23, %s767_s23  }
   0x7   : > { %s673_s28 = sadd.s32 1, %s604_s26   ;;  %s159_s29 = sadd.s32 1, %s600_s25 }
   0x8   : > { %s156_s30 = ssub.s32 %s604_s26, %s673_s28  ;;  %p169_p0 = scmp.ne.s32.totalorder %s600_s25, %s596_s24 }
   0x9   : > { %p157_p1 = scmp.eq.s32.totalorder %s156_s30, 0  ;;  %p170_p2 = scmp.eq.s32.totalorder %s669_s2, 1 }
   0xa   : > { %p175_p3 = scmp.ne.s32.totalorder %s596_s24, %s592_s23  ;;  %p176_p4 = scmp.eq.s32.totalorder %s476_s27, 1 }
   0xb   : > { %s684_s7 = scalar_select %p157_p1, %s600_s25, %s159_s29  }
   0xc   : > { %p686_p5 = por %p170_p2, %p169_p0  ;;  %p690_p6 = por %p176_p4, %p175_p3 }
   0xd   : > { %p479_p7 = scmp.ge.s32.totalorder %s604_s26, 1  ;;  %p217_p8 = scmp.lt.s32.totalorder %s604_s26, 3 }
   0xf   : > { %p218_p9 = pnand %p479_p7, %p217_p8 }
  0x10   : > { %p247_p10 = scmp.lt.s32.totalorder (!%p218_p9), %s669_s2, 1  ;;  %s607_s19 = smov (!%p218_p9), 126  }
  0x11   : > { %221 = sbr.rel (%p218_p9) target bundleno = 597 (0x255), region = 44  ;;  %s608_s20 = smov (!%p218_p9), 124  }
  0x12   : > { %s488_s15 = sshll.u32 (!%p218_p9), %s669_s2, 3  ;;  %s562_s10 = scalar_lea.hbm (!%p218_p9), %s764_s6, 16 }
  0x13   : > { %s412_s18 = scalar_lea.hbm (!%p218_p9), %s764_s6, %s488_s15 }
  0x14   : > { %s416_s21 = sshll.u32 (!%p218_p9), %s412_s18, 4  ;;  %s417_s21 = int_to_ptr.hbm [resolvable:$true] %s416_s21 }
  0x15   : > { %s556_s27 = sshra.s32 (!%p218_p9), %s417_s21, 4  ;;  %s557_s27 = int_to_ptr.hbm [resolvable:$true] %s556_s27 }
  0x16   : > { %v253_v1 = vld [vmem:[%s759_s1] sm:$0xf]  ;;  %v606_v2 = vmov 0   ;;  %s248_s12 = scalar_select %p247_p10, %s669_s2, 1  ;;  %v483_v4 = vld [vmem:[%s759_s1 + $0x4] sm:$0xf]  ;;  %v311_v21 = vlaneseq }
  0x17   : > { %535 = vset.pattern.permute.xlu1 %v606_v2  ;;  %536 = vset.pattern.permute.xlu0 %v606_v2  ;;  %v537_v5 = vld [vmem:[#allocation2] ss:$0 sm:$0xff]  ;;  %v309_v11 = vld [vmem:[%s761_s3] sm:$0xf]  ;;  %vm275_vm0 = vcmask 1031168   ;;  %vm294_vm1 = vcmask 1014784   ;;  %p563_p0 = scmp.lt.s32.totalorder %s557_s27, %s764_s6 }
  0x18   : > { %256 = vperm.xlu1 %535, %v253_v1   ;;  %s491_s13 = sshll.u32 %s248_s12, 3  ;;  %v484_v9 = vld [vmem:[%s759_s1 + $0x8] sm:$0xf]  ;;  %v310_v12 = vld [vmem:[%s762_s4] sm:$0xf]  ;;  %v312_v27 = vand.u32 127, %v311_v21 }
  0x19   : > { %s251_s16 = scalar_lea.vmem %s758_s0, %s491_s13  ;;  %vm315_vm4 = vcmask 1043456   ;;  %v609_v34 = vmov 64.0   ;;  %vm373_vm9 = vcmask 31744   ;;  %s244_s13 = sand.u32 1, %s596_s24  }
  0x1a   : > { %v252_v3 = vld [vmem:[%s251_s16] sm:$0xff]  ;;  %vm313_vm3 = vcmp.lt.s32.totalorder %v312_v27, 16  ;;  %538 = vrcp.f32 %v609_v34  ;;  %s480_s14 = sshll.u32 %s244_s13, 3  ;;  %s402_s22 = scalar_lea.sflag [#allocation4], %s244_s13 }
  0x1b   : > { %268 = vst [vmem:[#allocation1] ss:$2 sm:$0xff] %v252_v3  ;;  %s558_s29 = scalar_lea.hbm %s557_s27, 8 }
  0x1c   : > { %p559_p11 = scmp.ne.s32.totalorder %s557_s27, %s558_s29  ;;  %p564_p1 = scmp.lt.s32.totalorder %s562_s10, %s558_s29 }
  0x1e   : > { %p560_p12 = pnand %p559_p11, %p686_p5  ;;  %p565_p2 = por %p564_p1, %p563_p0 }
  0x20   : > { %264 = vperm.xlu1 %535, %v483_v4   ;;  %v539_v35 = vpop.eup %538  ;;  %p561_p13 = pneg %p560_p12 }
  0x21   : > { %v327_v36 = vmul.f32 64.0, %v539_v35  ;;  %vm331_vm5 = vweird.f32 %v539_v35 }
  0x22   : > { %v269_v6 = vld.sshfl [vmem:[#allocation1] sm:$0xff pattern:$0x75316420]  ;;  %v270_v7 = vld.sshfl [vmem:[#allocation1 + $0x8] sm:$0xff pattern:$0x75316420]  ;;  %p566_p3 = pnand %p565_p2, %p561_p13 }
  0x23   : > { %271 = vrot.lane.b32.xlu0 %v269_v6, %s607_s19  ;;  %287 = vst [vmem:[#allocation1] ss:$2 sm:$0xff] %v252_v3  ;;  %v328_v37 = vsub.f32 1.0, %v327_v36 }
  0x25   : > { %v329_v41 = vmul.f32 %v539_v35, %v328_v37 }
  0x27   : > { %v330_v44 = vadd.f32 %v539_v35, %v329_v41 }
  0x28   : > { %304 = vperm.xlu1 %535, %v537_v5  }
  0x29   : > { %v332_v47 = vsel %vm331_vm5, %v539_v35, %v330_v44 }
  0x2a   : > { %v288_v8 = vld.sshfl [vmem:[#allocation1] sm:$0xff pattern:$0x75316420]  ;;  %v289_v10 = vld.sshfl [vmem:[#allocation1 + $0x8] sm:$0xff pattern:$0x75316420] }
  0x2b   : > { %273 = vrot.lane.b32.xlu0 %v270_v7, %s607_s19  ;;  %290 = vrot.lane.b32.xlu2 %v288_v8, %s608_s20  ;;  %s246_s19 = scalar_lea.vmem [#allocation3], %s480_s14 }
  0x33   : > { %284 = vperm.xlu0 %536, %v484_v9   ;;  %292 = vrot.lane.b32.xlu2 %v289_v10, %s608_s20  ;;  %s414_s20 = sshll.u32 %s246_s19, 4  ;;  %s415_s20 = int_to_ptr.vmem [resolvable:$true] %s414_s20 }
  0x3b   : > { %350 = vperm.xlu0 %536, %v309_v11  }
  0x43   : > { %368 = vperm.xlu0 %536, %v310_v12   ;;  %v372_v12 = vld [vmem:[%s763_s5] sm:$0xff] }
  0x85   : > { %v291_v15 = vpop.permute.xlu2 %290 }
  0x8a   : > { %v257_v13 = vpop.permute.xlu1 %256 }
  0x8b   : > { %v259_v22 = vmul.f32 %v257_v13, %v252_v3 }
  0x8d   : > { %v293_v19 = vpop.permute.xlu2 %292 }
  0x8e   : > { %v295_v24 = vsel %vm294_vm1, %v291_v15, %v293_v19 }
  0x92   : > { %v265_v17 = vpop.permute.xlu1 %264 }
  0x95   : > { %v272_v14 = vpop.permute.xlu0 %271 }
  0x9a   : > { %v305_v29 = vpop.permute.xlu1 %304 }
  0x9d   : > { %v274_v16 = vpop.permute.xlu0 %273 }
  0x9e   : > { %v276_v18 = vsel %vm275_vm0, %v272_v14, %v274_v16 }
  0x9f   : > { %v278_v20 = vmul.f32 %v276_v18, %v265_v17 }
  0xa1   : > { %v279_v25 = vadd.f32 %v278_v20, %v259_v22 }
  0xa5   : > { %v285_v23 = vpop.permute.xlu0 %284 }
  0xa6   : > { %v297_v26 = vmul.f32 %v295_v24, %v285_v23 }
  0xa8   : > { %v298_v28 = vadd.f32 %v297_v26, %v279_v25 }
  0xaa   : > { %vm300_vm2 = vcmp.ge.f32.partialorder %v298_v28, 0.0  ;;  %v307_v30 = vmul.f32 %v305_v29, %v298_v28 }
  0xac   : > { %v308_v31 = vsel %vm300_vm2, %v298_v28, %v307_v30 }
  0xad   : > { %v314_v32 = vsel %vm313_vm3, %v308_v31, 0.0  ;;  %v351_v2 = vpop.permute.xlu0 %350 }
  0xae   : > { %v316_v33 = vsel %vm315_vm4, %v314_v32, 0.0 }
  0xaf   : > { %317 = vadd.xlane.f32.xlu2 %v316_v33 }
  0xb5   : > { %v369_v10 = vpop.permute.xlu0 %368 }
 0x122   : > { %v318_v38 = vpop.xlane.xlu2 %317 }
 0x123   : > { %v319_v39 = vsel %vm315_vm4, %v318_v38, 0.0 }
 0x124   : > { %v320_v40 = vrot.slane %v319_v39, 4 }
 0x126   : > { %v321_v42 = vadd.f32 %v320_v40, %v319_v39 }
 0x128   : > { %v322_v43 = vrot.slane %v321_v42, 2 }
 0x12a   : > { %v323_v45 = vadd.f32 %v322_v43, %v321_v42 }
 0x12c   : > { %v324_v46 = vrot.slane %v323_v45, 1 }
 0x12e   : > { %v325_v48 = vadd.f32 %v324_v46, %v323_v45 }
 0x130   : > { %v333_v49 = vmul.f32 %v332_v47, %v325_v48 }
 0x132   : > { %v334_v50 = vsub.f32 %v308_v31, %v333_v49 }
 0x134   : > { %v335_v51 = vmul.f32 %v334_v50, %v334_v50  ;;  %v353_v7 = vmul.f32 %v351_v2, %v334_v50 }
 0x136   : > { %v336_v52 = vsel %vm313_vm3, %v335_v51, 0.0 }
 0x137   : > { %v337_v53 = vsel %vm315_vm4, %v336_v52, 0.0 }
 0x138   : > { %338 = vadd.xlane.f32.xlu1 %v337_v53 }
 0x1ab   : > { %v339_v54 = vpop.xlane.xlu1 %338 }
 0x1ac   : > { %v340_v55 = vsel %vm315_vm4, %v339_v54, 0.0 }
 0x1ad   : > { %v341_v56 = vrot.slane %v340_v55, 4 }
 0x1af   : > { %v342_v57 = vadd.f32 %v341_v56, %v340_v55 }
 0x1b1   : > { %v343_v58 = vrot.slane %v342_v57, 2 }
 0x1b3   : > { %v344_v59 = vadd.f32 %v343_v58, %v342_v57 }
 0x1b5   : > { %v345_v60 = vrot.slane %v344_v59, 1 }
 0x1b7   : > { %v346_v61 = vadd.f32 %v345_v60, %v344_v59 }
 0x1b9   : > { %v347_v62 = vmul.f32 %v346_v61, %v332_v47 }
 0x1bb   : > { %v354_v63 = vadd.f32 1e-08, %v347_v62 }
 0x1bd   : > { %540 = vrsqrt.f32 %v354_v63  ;;  %vm361_vm7 = vweird.f32 %v354_v63 }
 0x1c3   : > { %v541_v0 = vpop.eup %540 }
 0x1c4   : > { %v356_v1 = vmul.f32 %v541_v0, %v354_v63  ;;  %vm362_vm6 = vweird.f32 %v541_v0 }
 0x1c5   : > { %vm363_vm8 = vmor %vm361_vm7, %vm362_vm6 }
 0x1c6   : > { %v357_v3 = vmul.f32 %v541_v0, %v356_v1 }
 0x1c8   : > { %v358_v4 = vmul.f32 0.5, %v357_v3 }
 0x1ca   : > { %v359_v5 = vsub.f32 1.5, %v358_v4 }
 0x1cc   : > { %v360_v6 = vmul.f32 %v541_v0, %v359_v5 }
 0x1ce   : > { %v364_v8 = vsel %vm363_vm8, %v541_v0, %v360_v6 }
 0x1cf   : > { %v365_v9 = vmul.f32 %v364_v8, %v353_v7 }
 0x1d1   : > { %v371_v11 = vadd.f32 %v369_v10, %v365_v9 }
 0x1d3   : > { %485 = vmatpush.msk.msra.mxu0 %vm315_vm4, %v371_v11 }
 0x1d4   : > { %486 = vmatmul.msk.f32.vlgmr.msra.gmra.mxu0 %vm373_vm9, %v372_v12 }
 0x251   : > { %v397_v13 = vpop.f32.mrf.mxu0 }
 0x252   : > { %400 = vst [vmem:[%s246_s19] sm:$0xff] %v397_v13 }
 0x253   : > { %569 = shalt.err (!%p566_p3)
}
 0x254   : > { %492 = dma.vmem_to_hbm [thread:$0]  (%p686_p5), %s415_s20, 128, %s417_s21, %s402_s22  }
 0x255 PF: > { %p498_p4 = scmp.ge.s32.totalorder %s604_s26, 2  ;;  %s428_s13 = sand.u32 1, %s592_s23  }
 0x256   : > { %s429_s14 = scalar_lea.sflag [#allocation4], %s428_s13 }
 0x257   : > { %p495_p7 = pnand %p498_p4, %p690_p6 }
 0x259   : > { %p496_p8 = pneg %p495_p7 }
 0x25b   : > { %587 = dma.done.wait (%p496_p8), %s429_s14, 128  }
 0x25c   : > { %589 = vsyncadd (%p496_p8), %s429_s14, 4294967168  ;;  %p18_p9 = scmp.ge.s32.totalorder %s673_s28, 4   ;;  %s767_s23 = smov %s596_s24 }
 0x25d   : > { %s768_s24 = smov %s600_s25  ;;  %s769_s25 = smov %s684_s7 }
 0x25e   : > { %s770_s26 = smov %s673_s28  ;;  %20 = sbr.rel (!%p18_p9) target bundleno = 6 (0x6), region = 81 }
 0x263   :  { %435 = vsyncpa [#allocation4], 1 }
 0x264   :  { %437 = vsyncpa [#allocation4 + $0x1], 1 }

</bundles_post_ra>
